<compile_context>
chip_gen: v5e
topology: v5e:2x2
jax: 0.10.0
libtpu: 0.0.40
codegen_flags: <defaults>
</compile_context>

<pallas_src>
import jax
import jax.numpy as jnp
from jax import lax
from jax.experimental import pallas as pl
from jax.experimental.pallas import tpu as pltpu


def _attention_kernel(x_ref, wq_ref, wk_ref, wv_ref, wp_ref, b_ref, o_ref, acc_ref):
    """One grid step = one (batch tile, head) pair.

    x_ref:   (Bt, N, C)   input tokens for this batch tile
    wq_ref:  (1, C, hd)   this head's Q weight (scale pre-baked)
    wk_ref:  (1, C, hd)   this head's K weight
    wv_ref:  (1, C, hd)   this head's V weight
    wp_ref:  (1, hd, C)   this head's rows of the output-projection weight
    b_ref:   (1, C)       output-projection bias
    o_ref:   (Bt, N, C)   output (written on the last head)
    acc_ref: (Bt*N, C)    f32 accumulator for the output projection
    """
    h = pl.program_id(1)
    bt, n, c = x_ref.shape
    cdt = x_ref.dtype                      # MXU operand dtype (bf16 path stays bf16)

    # Flatten the batch tile so all matmuls see M = Bt*N rows (fills the MXU).
    x2d = x_ref[...].reshape(bt * n, c)

    # Per-head Q/K/V projections: three clean 2-D matmuls, no lane slicing.
    # `scale` is already folded into wq by the wrapper.
    q = jnp.dot(x2d, wq_ref[0], preferred_element_type=jnp.float32).astype(cdt)
    k = jnp.dot(x2d, wk_ref[0], preferred_element_type=jnp.float32).astype(cdt)
    v = jnp.dot(x2d, wv_ref[0], preferred_element_type=jnp.float32).astype(cdt)

    # Initialize the projection accumulator with the bias on the first head.
    @pl.when(h == 0)
    def _():
        acc_ref[...] = jnp.broadcast_to(
            b_ref[...].astype(jnp.float32), acc_ref.shape)

    # Attention is per batch element; this static loop is over the (small)
    # batch tile, NOT over heads, and uses only row (sublane) slices.
    ctx_rows = []
    for b in range(bt):
        qb = q[b * n:(b + 1) * n]          # (N, hd)
        kb = k[b * n:(b + 1) * n]
        vb = v[b * n:(b + 1) * n]
        # Q @ K^T without materializing K^T: contract head_dim of both operands.
        s = lax.dot_general(qb, kb, (((1,), (1,)), ((), ())),
                            preferred_element_type=jnp.float32)       # (N, N) f32
        # Numerically-stable softmax, all math in f32 (v5e-safe).
        s = s - jnp.max(s, axis=-1, keepdims=True)
        p = jnp.exp(s)
        p = p * pl.reciprocal(jnp.sum(p, axis=-1, keepdims=True), approx=True)
        # P @ V with MXU operands in the input dtype, f32 accumulation.
        ctx_rows.append(jnp.dot(p.astype(cdt), vb,
                                preferred_element_type=jnp.float32))  # (N, hd)
    ctx = ctx_rows[0] if bt == 1 else jnp.concatenate(ctx_rows, axis=0)  # (Bt*N, hd)

    # Accumulate this head's slice of the output projection:
    #   proj(concat_h ctx_h) + bias == bias + sum_h ctx_h @ Wp[h]
    acc_ref[...] += jnp.dot(ctx.astype(cdt), wp_ref[0],
                            preferred_element_type=jnp.float32)

    # Write the finished (bias + all heads) block on the last head.
    @pl.when(h == pl.num_programs(1) - 1)
    def _():
        o_ref[...] = acc_ref[...].reshape(o_ref.shape).astype(o_ref.dtype)


def _pick_batch_tile(B, N):
    """Choose Bt so Bt*N ~ 256 rows, while keeping >=2 parallel grid steps."""
    target_rows = 256
    bt = max(1, min(B, target_rows // max(N, 1)))
    while B % bt:
        bt -= 1
    if B >= 2 and B // bt < 2:
        bt = max(1, bt // 2)
        while B % bt:
            bt -= 1
    return bt


def attention_pallas(x, qkv_w, proj_w, proj_b, *, num_heads, scale, batch_tile=None):
    """x: (B, N, C); qkv_w: (3C, C); proj_w: (C, C); proj_b: (C,) (torch layout)."""
    B, N, C = x.shape
    H = num_heads
    assert C % H == 0, "C must be divisible by num_heads"
    hd = C // H

    # Rearrange weights (wrapper-side layout plumbing, done once in XLA):
    #  - per-head Q/K/V weights as (H, C, hd), scale baked into W_q
    #  - per-head output-projection rows as (H, hd, C)
    wqkv_t = qkv_w.T                                                   # (C, 3C)
    wq = wqkv_t[:, 0 * C:1 * C].reshape(C, H, hd).transpose(1, 0, 2) * scale
    wk = wqkv_t[:, 1 * C:2 * C].reshape(C, H, hd).transpose(1, 0, 2)
    wv = wqkv_t[:, 2 * C:3 * C].reshape(C, H, hd).transpose(1, 0, 2)
    wp = proj_w.T.reshape(H, hd, C)
    bias = proj_b.reshape(1, C)

    bt = batch_tile or _pick_batch_tile(B, N)
    assert B % bt == 0
    grid = (B // bt, H)

    return pl.pallas_call(
        _attention_kernel,
        out_shape=jax.ShapeDtypeStruct((B, N, C), x.dtype),
        grid_spec=pltpu.PrefetchScalarGridSpec(
            num_scalar_prefetch=0,
            grid=grid,
            in_specs=[
                pl.BlockSpec((bt, N, C), lambda i, h: (i, 0, 0)),   # x (same across h)
                pl.BlockSpec((1, C, hd), lambda i, h: (h, 0, 0)),   # W_q head h
                pl.BlockSpec((1, C, hd), lambda i, h: (h, 0, 0)),   # W_k head h
                pl.BlockSpec((1, C, hd), lambda i, h: (h, 0, 0)),   # W_v head h
                pl.BlockSpec((1, hd, C), lambda i, h: (h, 0, 0)),   # W_proj rows, head h
                pl.BlockSpec((1, C), lambda i, h: (0, 0)),          # proj bias
            ],
            out_specs=pl.BlockSpec((bt, N, C), lambda i, h: (i, 0, 0)),
            scratch_shapes=[pltpu.VMEM((bt * N, C), jnp.float32)],
        ),
        compiler_params=pltpu.CompilerParams(
            # batch tiles shard across TensorCores; head axis is the reduction.
            dimension_semantics=("parallel", "arbitrary"),
        ),
    )(x, wq, wk, wv, wp, bias)


def attention_reference(x, qkv_w, proj_w, proj_b, *, num_heads, scale):
    """Pure-JAX reference mirroring the PyTorch forward pass exactly."""
    B, N, C = x.shape
    hd = C // num_heads
    qkv = x @ qkv_w.T                                                  # (B, N, 3C)
    qkv = qkv.reshape(B, N, 3, num_heads, hd).transpose(2, 0, 3, 1, 4)
    q, k, v = qkv[0], qkv[1], qkv[2]                                   # (B, H, N, hd)
    attn = (q @ jnp.swapaxes(k, -2, -1)) * scale                       # (B, H, N, N)
    attn = jax.nn.softmax(attn, axis=-1)
    out = (attn @ v).transpose(0, 2, 1, 3).reshape(B, N, C)
    return out @ proj_w.T + proj_b


if __name__ == "__main__":
    # Small shapes consistent with the module: B=2, N=8 tokens, dim C=32, 8 heads.
    B, N, C = 2, 8, 32
    num_heads = 8
    head_dim = C // num_heads
    scale = head_dim ** (-0.5)

    key = jax.random.PRNGKey(0)
    kx, kqkv, kproj, kbias = jax.random.split(key, 4)

    x = jax.random.normal(kx, (B, N, C), dtype=jnp.float32)
    # Torch-layout parameters (qkv_bias=False -> no qkv bias).
    qkv_w = jax.random.normal(kqkv, (3 * C, C), dtype=jnp.float32) * 0.05
    proj_w = jax.random.normal(kproj, (C, C), dtype=jnp.float32) * 0.05
    proj_b = jax.random.normal(kbias, (C,), dtype=jnp.float32) * 0.05

    out = attention_pallas(x, qkv_w, proj_w, proj_b,
                           num_heads=num_heads, scale=scale)
    out = jax.block_until_ready(out)

    ref = attention_reference(x, qkv_w, proj_w, proj_b,
                              num_heads=num_heads, scale=scale)
    assert out.shape == (B, N, C)
    assert jnp.allclose(out, ref, atol=2e-3, rtol=2e-3), "mismatch vs reference"

    print("KERNEL_OK")
</pallas_src>

<mosaic_0001>
module attributes {stable_mosaic.version = 11 : i64} {
  func.func @_attention_kernel(%arg0: i32, %arg1: i32, %arg2: memref<1x8x32xf32, #tpu.memory_space<vmem>>, %arg3: memref<1x32x4xf32, #tpu.memory_space<vmem>>, %arg4: memref<1x32x4xf32, #tpu.memory_space<vmem>>, %arg5: memref<1x32x4xf32, #tpu.memory_space<vmem>>, %arg6: memref<1x4x32xf32, #tpu.memory_space<vmem>>, %arg7: memref<1x32xf32, #tpu.memory_space<vmem>>, %arg8: memref<1x8x32xf32, #tpu.memory_space<vmem>>, %arg9: memref<8x32xf32, #tpu.memory_space<vmem>>) attributes {dimension_semantics = [#tpu.dimension_semantics<parallel>, #tpu.dimension_semantics<arbitrary>], iteration_bounds = array<i64: 2, 8>, scalar_prefetch = 0 : i64, scratch_operands = 1 : i64, tpu.core_type = #tpu.core_type<tc>, window_params = [{transform_indices = @transform_0, window_bounds = array<i64: 1, 8, 32>}, {transform_indices = @transform_1, window_bounds = array<i64: 1, 32, 4>}, {transform_indices = @transform_2, window_bounds = array<i64: 1, 32, 4>}, {transform_indices = @transform_3, window_bounds = array<i64: 1, 32, 4>}, {transform_indices = @transform_4, window_bounds = array<i64: 1, 4, 32>}, {pipeline_mode = #tpu.pipeline_mode<synchronous>, transform_indices = @transform_5, window_bounds = array<i64: 1, 32>}, {transform_indices = @transform_6, window_bounds = array<i64: 1, 8, 32>}]} {
    %c0 = arith.constant 0 : index
    %c0_0 = arith.constant 0 : index
    %c0_1 = arith.constant 0 : index
    %0 = vector.load %arg2[%c0, %c0_0, %c0_1] : memref<1x8x32xf32, #tpu.memory_space<vmem>>, vector<1x8x32xf32>
    %1 = vector.shape_cast %0 : vector<1x8x32xf32> to vector<8x32xf32>
    %c0_2 = arith.constant 0 : index
    %c0_3 = arith.constant 0 : index
    %c0_4 = arith.constant 0 : index
    %2 = vector.load %arg3[%c0_2, %c0_3, %c0_4] : memref<1x32x4xf32, #tpu.memory_space<vmem>>, vector<1x32x4xf32>
    %3 = vector.shape_cast %2 : vector<1x32x4xf32> to vector<32x4xf32>
    %cst = arith.constant dense<0.000000e+00> : vector<8x4xf32>
    %4 = tpu.matmul %1, %3, %cst {dimension_numbers = #tpu.dot_dimension_numbers<[1], [0], [0], [1], [0, 0, 1, 1], [], []>} : vector<8x32xf32>, vector<32x4xf32>, vector<8x4xf32> -> vector<8x4xf32>
    %c0_5 = arith.constant 0 : index
    %c0_6 = arith.constant 0 : index
    %c0_7 = arith.constant 0 : index
    %5 = vector.load %arg4[%c0_5, %c0_6, %c0_7] : memref<1x32x4xf32, #tpu.memory_space<vmem>>, vector<1x32x4xf32>
    %6 = vector.shape_cast %5 : vector<1x32x4xf32> to vector<32x4xf32>
    %cst_8 = arith.constant dense<0.000000e+00> : vector<8x4xf32>
    %7 = tpu.matmul %1, %6, %cst_8 {dimension_numbers = #tpu.dot_dimension_numbers<[1], [0], [0], [1], [0, 0, 1, 1], [], []>} : vector<8x32xf32>, vector<32x4xf32>, vector<8x4xf32> -> vector<8x4xf32>
    %c0_9 = arith.constant 0 : index
    %c0_10 = arith.constant 0 : index
    %c0_11 = arith.constant 0 : index
    %8 = vector.load %arg5[%c0_9, %c0_10, %c0_11] : memref<1x32x4xf32, #tpu.memory_space<vmem>>, vector<1x32x4xf32>
    %9 = vector.shape_cast %8 : vector<1x32x4xf32> to vector<32x4xf32>
    %cst_12 = arith.constant dense<0.000000e+00> : vector<8x4xf32>
    %10 = tpu.matmul %1, %9, %cst_12 {dimension_numbers = #tpu.dot_dimension_numbers<[1], [0], [0], [1], [0, 0, 1, 1], [], []>} : vector<8x32xf32>, vector<32x4xf32>, vector<8x4xf32> -> vector<8x4xf32>
    %c0_i32 = arith.constant 0 : i32
    %11 = arith.cmpi eq, %arg1, %c0_i32 : i32
    %12 = arith.extui %11 : i1 to i32
    %c0_i32_13 = arith.constant 0 : i32
    %13 = arith.cmpi ne, %12, %c0_i32_13 : i32
    scf.if %13 {
      %c0_27 = arith.constant 0 : index
      %c0_28 = arith.constant 0 : index
      %35 = vector.load %arg7[%c0_27, %c0_28] : memref<1x32xf32, #tpu.memory_space<vmem>>, vector<1x32xf32>
      %36 = vector.shape_cast %35 : vector<1x32xf32> to vector<1x32xf32>
      %37 = vector.broadcast %36 : vector<1x32xf32> to vector<8x32xf32>
      %c0_29 = arith.constant 0 : index
      %c0_30 = arith.constant 0 : index
      %38 = vector.load %arg9[%c0_29, %c0_30] : memref<8x32xf32, #tpu.memory_space<vmem>>, vector<8x32xf32>
      tpu.vector_store %arg9[%c0_29, %c0_30], %37 {strides = array<i32>} : memref<8x32xf32, #tpu.memory_space<vmem>>, vector<8x32xf32>,
    } else {
    }
    %cst_14 = arith.constant dense<0.000000e+00> : vector<8x8xf32>
    %14 = tpu.matmul %4, %7, %cst_14 {dimension_numbers = #tpu.dot_dimension_numbers<[1], [1], [0], [0], [0, 0, 1, 0], [], []>} : vector<8x4xf32>, vector<8x4xf32>, vector<8x8xf32> -> vector<8x8xf32>
    %cst_15 = arith.constant dense<0xFF800000> : vector<8xf32>
    %15 = vector.multi_reduction <maximumf>, %14, %cst_15 [1] : vector<8x8xf32> to vector<8xf32>
    %16 = vector.shape_cast %15 : vector<8xf32> to vector<8x1xf32>
    %17 = vector.broadcast %16 : vector<8x1xf32> to vector<8x8xf32>
    %18 = arith.subf %14, %17 : vector<8x8xf32>
    %19 = math.exp %18 : vector<8x8xf32>
    %cst_16 = arith.constant dense<0.000000e+00> : vector<8xf32>
    %20 = vector.multi_reduction <add>, %19, %cst_16 [1] : vector<8x8xf32> to vector<8xf32>
    %21 = vector.shape_cast %20 : vector<8xf32> to vector<8x1xf32>
    %22 = tpu.reciprocal %21 {approx = true} : vector<8x1xf32> -> vector<8x1xf32>
    %23 = vector.broadcast %22 : vector<8x1xf32> to vector<8x8xf32>
    %24 = arith.mulf %19, %23 : vector<8x8xf32>
    %cst_17 = arith.constant dense<0.000000e+00> : vector<8x4xf32>
    %25 = tpu.matmul %24, %10, %cst_17 {dimension_numbers = #tpu.dot_dimension_numbers<[1], [0], [0], [1], [0, 0, 1, 1], [], []>} : vector<8x8xf32>, vector<8x4xf32>, vector<8x4xf32> -> vector<8x4xf32>
    %c0_18 = arith.constant 0 : index
    %c0_19 = arith.constant 0 : index
    %26 = vector.load %arg9[%c0_18, %c0_19] : memref<8x32xf32, #tpu.memory_space<vmem>>, vector<8x32xf32>
    %c0_20 = arith.constant 0 : index
    %c0_21 = arith.constant 0 : index
    %c0_22 = arith.constant 0 : index
    %27 = vector.load %arg6[%c0_20, %c0_21, %c0_22] : memref<1x4x32xf32, #tpu.memory_space<vmem>>, vector<1x4x32xf32>
    %28 = vector.shape_cast %27 : vector<1x4x32xf32> to vector<4x32xf32>
    %cst_23 = arith.constant dense<0.000000e+00> : vector<8x32xf32>
    %29 = tpu.matmul %25, %28, %cst_23 {dimension_numbers = #tpu.dot_dimension_numbers<[1], [0], [0], [1], [0, 0, 1, 1], [], []>} : vector<8x4xf32>, vector<4x32xf32>, vector<8x32xf32> -> vector<8x32xf32>
    %30 = arith.addf %26, %29 : vector<8x32xf32>
    %c0_24 = arith.constant 0 : index
    %c0_25 = arith.constant 0 : index
    %31 = vector.load %arg9[%c0_24, %c0_25] : memref<8x32xf32, #tpu.memory_space<vmem>>, vector<8x32xf32>
    tpu.vector_store %arg9[%c0_24, %c0_25], %30 {strides = array<i32>} : memref<8x32xf32, #tpu.memory_space<vmem>>, vector<8x32xf32>,
    %c7_i32 = arith.constant 7 : i32
    %32 = arith.cmpi eq, %arg1, %c7_i32 : i32
    %33 = arith.extui %32 : i1 to i32
    %c0_i32_26 = arith.constant 0 : i32
    %34 = arith.cmpi ne, %33, %c0_i32_26 : i32
    scf.if %34 {
      %c0_27 = arith.constant 0 : index
      %c0_28 = arith.constant 0 : index
      %35 = vector.load %arg9[%c0_27, %c0_28] : memref<8x32xf32, #tpu.memory_space<vmem>>, vector<8x32xf32>
      %36 = vector.shape_cast %35 : vector<8x32xf32> to vector<1x8x32xf32>
      %c0_29 = arith.constant 0 : index
      %c0_30 = arith.constant 0 : index
      %c0_31 = arith.constant 0 : index
      %37 = vector.load %arg8[%c0_29, %c0_30, %c0_31] : memref<1x8x32xf32, #tpu.memory_space<vmem>>, vector<1x8x32xf32>
      tpu.vector_store %arg8[%c0_29, %c0_30, %c0_31], %36 {strides = array<i32>} : memref<1x8x32xf32, #tpu.memory_space<vmem>>, vector<1x8x32xf32>,
    } else {
    }
    return
  }
  func.func @transform_0(%arg0: i32, %arg1: i32) -> (i32, i32, i32) {
    %c0_i32 = arith.constant 0 : i32
    %c0_i32_0 = arith.constant 0 : i32
    %c0_i32_1 = arith.constant 0 : i32
    return %arg0, %c0_i32, %c0_i32_0 : i32, i32, i32
  }
  func.func @transform_1(%arg0: i32, %arg1: i32) -> (i32, i32, i32) {
    %c0_i32 = arith.constant 0 : i32
    %c0_i32_0 = arith.constant 0 : i32
    %c0_i32_1 = arith.constant 0 : i32
    return %arg1, %c0_i32, %c0_i32_0 : i32, i32, i32
  }
  func.func @transform_2(%arg0: i32, %arg1: i32) -> (i32, i32, i32) {
    %c0_i32 = arith.constant 0 : i32
    %c0_i32_0 = arith.constant 0 : i32
    %c0_i32_1 = arith.constant 0 : i32
    return %arg1, %c0_i32, %c0_i32_0 : i32, i32, i32
  }
  func.func @transform_3(%arg0: i32, %arg1: i32) -> (i32, i32, i32) {
    %c0_i32 = arith.constant 0 : i32
    %c0_i32_0 = arith.constant 0 : i32
    %c0_i32_1 = arith.constant 0 : i32
    return %arg1, %c0_i32, %c0_i32_0 : i32, i32, i32
  }
  func.func @transform_4(%arg0: i32, %arg1: i32) -> (i32, i32, i32) {
    %c0_i32 = arith.constant 0 : i32
    %c0_i32_0 = arith.constant 0 : i32
    %c0_i32_1 = arith.constant 0 : i32
    return %arg1, %c0_i32, %c0_i32_0 : i32, i32, i32
  }
  func.func @transform_5(%arg0: i32, %arg1: i32) -> (i32, i32) {
    %c0_i32 = arith.constant 0 : i32
    %c0_i32_0 = arith.constant 0 : i32
    %c0_i32_1 = arith.constant 0 : i32
    return %c0_i32, %c0_i32_0 : i32, i32
  }
  func.func @transform_6(%arg0: i32, %arg1: i32) -> (i32, i32, i32) {
    %c0_i32 = arith.constant 0 : i32
    %c0_i32_0 = arith.constant 0 : i32
    %c0_i32_1 = arith.constant 0 : i32
    return %arg0, %c0_i32, %c0_i32_0 : i32, i32, i32
  }
}

</mosaic_0001>

<bundles_post_ra>
// kernel: tpu_custom_call.1
= control target key start
LH: loop header
LB: loop body
LE: loop exit
PB: predicated region body
PF: predicated region fallthrough
CT: control target
= control target key end

     0   :  { %11 = vsyncpa [#allocation4], 0  ;;  %s1052_s0 = inlined_call_operand.vmem [shape: f32[2,8,32], index: 0, kind: input, shape index: {}]   ;;  %s1053_s1 = inlined_call_operand.vmem [shape: f32[8,32,4], index: 1, kind: input, shape index: {}]   ;;  %s1054_s2 = inlined_call_operand.vmem [shape: f32[8,32,4], index: 2, kind: input, shape index: {}]   ;;  %s1055_s3 = inlined_call_operand.vmem [shape: f32[8,32,4], index: 3, kind: input, shape index: {}]   ;;  %s1056_s4 = inlined_call_operand.vmem [shape: f32[8,4,32], index: 4, kind: input, shape index: {}]   ;;  %s1057_s5 = inlined_call_operand.vmem [shape: f32[1,32], index: 5, kind: input, shape index: {}]   ;;  %s1058_s6 = inlined_call_operand.hbm [shape: f32[2,8,32], index: 6, kind: output, shape index: {}]  }
   0x1   :  { %13 = vsyncpa [#allocation4 + $0x1], 0  ;;  %s893_s21 = smov 0   ;;  %s895_s22 = smov 0  }
   0x2   :  { %s897_s23 = smov 0   ;;  %s899_s24 = smov 0  }
   0x3   :  { %s901_s25 = smov 0   ;;  %s903_s26 = smov 0  }
   0x4   :  { %s905_s27 = smov 0   ;;  %s907_s28 = smov 0  }
   0x5 LB: > { %1063 = sst [smem:[#allocation6_spill]] %s848_s26  ;;  %s655_s29 = sadd.s32 4294967295, %s856_s28   ;;  %s856_s28 = sphi %s907_s28, %s19_s28   ;;  %s852_s27 = sphi %s905_s27, %s1075_s27   ;;  %s848_s26 = sphi %s903_s26, %s1074_s26   ;;  %s844_s25 = sphi %s901_s25, %s1073_s25   ;;  %s840_s24 = sphi %s899_s24, %s1072_s24   ;;  %s836_s23 = sphi %s897_s23, %s1078_s23   ;;  %s832_s22 = sphi %s895_s22, %s1077_s22   ;;  %s828_s21 = sphi %s893_s21, %s1076_s21  }
   0x6   : > { %1064 = sst [smem:[#allocation7_spill]] %s852_s27  ;;  %s656_s30 = sadd.s32 4294967294, %s856_s28  }
   0x7   : > { %s28_s7 = sadd.s32 1, %s848_s26  ;;  %s31_s8 = sadd.s32 1, %s852_s27 }
   0x8   : > { %p29_p0 = scmp.ge.s32.totalorder %s28_s7, 8  ;;  %p199_p1 = scmp.ne.s32.totalorder %s836_s23, %s832_s22 }
   0x9   : > { %p200_p2 = scmp.eq.s32.totalorder %s655_s29, 15  ;;  %p205_p4 = scmp.ne.s32.totalorder %s832_s22, %s828_s21 }
   0xa   : > { %s1080_s7 = smov (%p29_p0, %s28_s7), 0  ;;  %s1082_s8 = smov (!%p29_p0, %s31_s8), %s852_s27 }
   0xb   : > { %1065 = sst [smem:[#allocation8_spill]] %s1080_s7  ;;  %p942_p3 = por %p200_p2, %p199_p1 }
   0xc   : > { %p33_p5 = scmp.ge.s32.totalorder %s1082_s8, 2  ;;  %p206_p6 = scmp.eq.s32.totalorder %s656_s30, 15 }
   0xd   : > { %p659_p7 = scmp.ge.s32.totalorder %s856_s28, 1  ;;  %p265_p8 = scmp.lt.s32.totalorder %s856_s28, 17 }
   0xe   : > { %s1084_s8 = smov (%p33_p5, %s1082_s8), 0  ;;  %p952_p9 = por %p206_p6, %p205_p4 }
   0xf   : > { %1067 = sst [smem:[#allocation9_spill]] %s1084_s8  ;;  %p266_p10 = pnand %p659_p7, %p265_p8 }
  0x10   : > { %s186_s11 = ssub.s32 %s852_s27, %s1084_s8  ;;  %s189_s12 = sadd.s32 1, %s836_s23 }
  0x11   : > { %p187_p11 = scmp.eq.s32.totalorder %s186_s11, 0  ;;  %269 = sbr.rel (%p266_p10) target bundleno = 842 (0x34a), region = 44 }
  0x12   : > { %p317_p12 = scmp.lt.s32.totalorder (!%p266_p10), %s840_s24, 7  ;;  %s1060_s14 = sand.u32 (!%p266_p10), 1, %s832_s22  }
  0x13   : > { %s960_s13 = scalar_select %p187_p11, %s836_s23, %s189_s12  }
  0x14   : > { %s966_s15 = sshll.u32 (!%p266_p10), %s1060_s14, 3  ;;  %p313_p13 = scmp.lt.s32.totalorder (!%p266_p10), %s844_s25, 1 }
  0x15   : > { %1069 = sst [smem:[#allocation10_spill]] %s960_s13  ;;  %s312_s26 = scalar_lea.vmem (!%p266_p10), [#allocation3], %s966_s15 }
  0x16   : > { %s318_s16 = scalar_select %p317_p12, %s840_s24, 7  ;;  %vm341_vm0 = vcmask 261120  }
  0x17   : > { %p672_p0 = scmp.ne.s32.totalorder %s840_s24, 0 }
  0x18   : > { %s683_s17 = sshll.u32 %s318_s16, 5  ;;  %s668_s18 = sshll.u32 %s318_s16, 2 }
  0x19   : > { %s331_s29 = scalar_lea.vmem %s1055_s3, %s683_s17  ;;  %s976_s12 = scalar_lea.vmem %s1056_s4, %s668_s18 }
  0x1a   : > { %v392_v0 = vld [vmem:[%s331_s29 + $0x18] sm:$0xff]  ;;  %v391_v1 = vld [vmem:[%s331_s29 + $0x10] sm:$0xff]  ;;  %s321_s14 = scalar_lea.vmem %s1053_s1, %s683_s17  ;;  %s326_s13 = scalar_lea.vmem %s1054_s2, %s683_s17  ;;  %v390_v4 = vld [vmem:[%s331_s29 + $0x8] sm:$0xff] }
  0x1b   : > { %405 = vmatpush.msra.mxu2 %v392_v0  ;;  %v340_v2 = vld [vmem:[%s321_s14 + $0x18] sm:$0xff]  ;;  %s314_s16 = scalar_select %p313_p13, %s844_s25, 1  ;;  %v339_v5 = vld [vmem:[%s321_s14 + $0x10] sm:$0xff]  ;;  %v338_v7 = vld [vmem:[%s321_s14 + $0x8] sm:$0xff] }
  0x1c   : > { %v368_v3 = vld [vmem:[%s326_s13 + $0x18] sm:$0xff]  ;;  %357 = vmatpush.msra.mxu0 %v340_v2  ;;  %v367_v6 = vld [vmem:[%s326_s13 + $0x10] sm:$0xff]  ;;  %v366_v8 = vld [vmem:[%s326_s13 + $0x8] sm:$0xff] }
  0x1d   : > { %381 = vmatpush.msra.mxu1 %v368_v3  ;;  %406 = vmatpush.msra.mxu2 %v391_v1  ;;  %s661_s18 = sshll.u32 %s314_s16, 3  ;;  %v389_v9 = vld [vmem:[%s331_s29] sm:$0xff] }
  0x1e   : > { %s316_s19 = scalar_lea.vmem %s1052_s0, %s661_s18  ;;  %358 = vmatpush.msra.mxu0 %v339_v5  ;;  %v337_v11 = vld [vmem:[%s321_s14] sm:$0xff] }
  0x1f   : > { %382 = vmatpush.msra.mxu1 %v367_v6  ;;  %407 = vmatpush.msra.mxu2 %v390_v4  ;;  %v336_v10 = vld [vmem:[%s316_s19] sm:$0xff] }
  0x20   : > { %359 = vmatpush.msra.mxu0 %v338_v7  ;;  %v365_v12 = vld [vmem:[%s326_s13] sm:$0xff] }
  0x21   : > { %383 = vmatpush.msra.mxu1 %v366_v8  ;;  %408 = vmatpush.msra.mxu2 %v389_v9 }
  0x22   : > { %671 = vmatmul.msk.f32.vlgmr.msra.gmra.mxu2 %vm341_vm0, %v336_v10  ;;  %360 = vmatpush.msra.mxu0 %v337_v11 }
  0x23   : > { %384 = vmatpush.msra.mxu1 %v365_v12  ;;  %669 = vmatmul.msk.f32.vlgmr.msra.gmra.mxu0 %vm341_vm0, %v336_v10 }
  0x24   : > { %670 = vmatmul.msk.f32.vlgmr.msra.gmra.mxu1 %vm341_vm0, %v336_v10 }
  0xa0   : > { %v362_v13 = vpop.f32.mrf.mxu0 }
  0xa1   : > { %v386_v14 = vpop.f32.mrf.mxu1  ;;  %416 = sbr.rel (%p672_p0) target bundleno = 168 (0xa8), region = 48 }
  0xa5   : > { %v410_v15 = vpop.f32.mrf.mxu2 }
  0xa6   : > { %v757_v16 = vld [vmem:[%s1057_s5] ss:$0 sm:$0xff] }
  0xa7   : > { %421 = vst.msk [vmem:[#allocation2] sm:$0xff] %vm341_vm0, %v757_v16 }
  0xa8 PF: > { %vm422_vm1 = vcmask 31744   ;;  %vm449_vm2 = vcmask 64512   ;;  %v485_v27 = vld [vmem:[%s976_s12] sm:$0xf]  ;;  %vm489_vm3 = vcmask 1043456   ;;  %p678_p1 = scmp.ne.s32.totalorder %s840_s24, 7 }
  0xa9   : > { %673 = vmatpush.xpose.msk.msra.mxu3 %vm422_vm1, %v386_v14  ;;  %676 = vmatpush.msk.msrb.mxu0 %vm489_vm3, %v485_v27 }
  0xac   : > { %674 = vmatmul.msk.f32.vlgmr.msra.gmra.mxu3 %vm422_vm1, %v362_v13 }
  0xad   : > { %479 = vmatpush.msrb.mxu3 %v410_v15 }
  0xae   : > { %v484_v29 = vld [vmem:[#allocation2] sm:$0xff] }
 0x12f   : > { %v446_v17 = vpop.f32.mrf.mxu3 }
 0x130   : > { %v450_v18 = vsel %vm449_vm2, %v446_v17, -inf }
 0x131   : > { %451 = vmax.xlane.f32.xlu0 %v450_v18 }
 0x1a4   : > { %v452_v19 = vpop.xlane.xlu0 %451 }
 0x1a5   : > { %v453_v20 = vsub.f32 %v446_v17, %v452_v19 }
 0x1a7   : > { %v454_v21 = vmul.f32 1.442695, %v453_v20 }
 0x1a9   : > { %758 = vpow2.f32 %v454_v21 }
 0x1af   : > { %v759_v22 = vpop.eup %758 }
 0x1b0   : > { %v456_v23 = vsel %vm449_vm2, %v759_v22, 0.0 }
 0x1b1   : > { %457 = vadd.xlane.f32.xlu0 %v456_v23 }
 0x224   : > { %v458_v24 = vpop.xlane.xlu0 %457 }
 0x225   : > { %760 = vrcp.f32 %v458_v24 }
 0x22b   : > { %v761_v25 = vpop.eup %760 }
 0x22c   : > { %v460_v26 = vmul.f32 %v761_v25, %v759_v22 }
 0x22e   : > { %675 = vmatmul.msk.f32.vlgmr.msrb.gmra.mxu3 %vm449_vm2, %v460_v26 }
 0x2b1   : > { %v481_v28 = vpop.f32.mrf.mxu3 }
 0x2b2   : > { %677 = vmatmul.msk.f32.vlgmr.msrb.gmra.mxu0 %vm422_vm1, %v481_v28 }
 0x32e   : > { %518 = sbr.rel (%p678_p1) target bundleno = 827 (0x33b), region = 52 }
 0x32f   : > { %v510_v30 = vpop.f32.mrf.mxu0 }
 0x330   : > { %v513_v31 = vadd.f32 %v510_v30, %v484_v29 }
 0x332   : > { %514 = vst.msk [vmem:[#allocation2] sm:$0xff] %vm341_vm0, %v513_v31 }
 0x339   : > { %v519_v32 = vld [vmem:[#allocation2] sm:$0xff] }
 0x33a   : > { %520 = vst.msk [vmem:[%s312_s26] sm:$0xff] %vm341_vm0, %v519_v32 }
 0x33b PF: > { %s680_s13 = sshll.u32 %s844_s25, 3  ;;  %s534_s30 = sshll.u32 %s312_s26, 4  ;;  %s535_s30 = int_to_ptr.vmem [resolvable:$true] %s534_s30 }
 0x33c   : > { %s532_s29 = scalar_lea.hbm %s1058_s6, %s680_s13  ;;  %s1070_s11 = sand.u32 1, %s832_s22  }
 0x33d   : > { %s536_s24 = sshll.u32 %s532_s29, 4  ;;  %s522_s12 = scalar_lea.sflag [#allocation4], %s1070_s11  ;;  %s537_s24 = int_to_ptr.hbm [resolvable:$true] %s536_s24 }
 0x33e   : > { %s776_s16 = sshra.s32 %s537_s24, 4  ;;  %s782_s8 = scalar_lea.hbm %s1058_s6, 16  ;;  %s777_s16 = int_to_ptr.hbm [resolvable:$true] %s776_s16 }
 0x33f   : > { %s778_s18 = scalar_lea.hbm %s777_s16, 8  ;;  %p783_p6 = scmp.lt.s32.totalorder %s777_s16, %s1058_s6 }
 0x340   : > { %p779_p2 = scmp.ne.s32.totalorder %s777_s16, %s778_s18  ;;  %p784_p7 = scmp.lt.s32.totalorder %s782_s8, %s778_s18 }
 0x342   : > { %p780_p4 = pnand %p779_p2, %p942_p3  ;;  %p785_p8 = por %p784_p7, %p783_p6 }
 0x344   : > { %p781_p5 = pneg %p780_p4 }
 0x346   : > { %p786_p10 = pnand %p785_p8, %p781_p5 }
 0x348   : > { %789 = shalt.err (!%p786_p10)
}
 0x349   : > { %686 = dma.vmem_to_hbm [thread:$0]  (%p942_p3), %s535_s30, 128, %s537_s24, %s522_s12  }
 0x34a PF: > { %p692_p11 = scmp.ge.s32.totalorder %s856_s28, 2  ;;  %s548_s15 = sand.u32 1, %s828_s21  }
 0x34b   : > { %s549_s26 = scalar_lea.sflag [#allocation4], %s548_s15 }
 0x34c   : > { %p689_p12 = pnand %p692_p11, %p952_p9 }
 0x34e   : > { %p690_p13 = pneg %p689_p12 }
 0x350   : > { %823 = dma.done.wait (%p690_p13), %s549_s26, 128  }
 0x351   : > { %825 = vsyncadd (%p690_p13), %s549_s26, 4294967168  ;;  %s19_s28 = sadd.s32 1, %s856_s28   ;;  %s1071_s14 = sld [smem:[#allocation10_spill]] }
 0x352   : > { %p16_p0 = scmp.ge.s32.totalorder %s19_s28, 18   ;;  %s1072_s24 = sld [smem:[#allocation6_spill]] }
 0x353   : > { %s1073_s25 = sld [smem:[#allocation7_spill]]  ;;  %s1076_s21 = smov %s832_s22 }
 0x354   : > { %s1074_s26 = sld [smem:[#allocation8_spill]]  ;;  %s1077_s22 = smov %s836_s23 }
 0x355   : > { %s1075_s27 = sld [smem:[#allocation9_spill]]  ;;  %18 = sbr.rel (!%p16_p0) target bundleno = 5 (0x5), region = 99 }
 0x357   : > { %s1078_s23 = smov %s1071_s14 }
 0x35a   :  { %555 = vsyncpa [#allocation4], 1 }
 0x35b   :  { %557 = vsyncpa [#allocation4 + $0x1], 1 }

</bundles_post_ra>
